<compile_context>
chip_gen: v6e
topology: v6e:2x2x1
jax: 0.10.0
libtpu: 0.0.40
codegen_flags: <defaults>
</compile_context>

<pallas_src>
import functools

import jax
import jax.numpy as jnp
from jax.experimental import pallas as pl
from jax.experimental.pallas import tpu as pltpu

_LANE = 128
_VMEM_BUDGET = 32 * 1024 * 1024      # target working set (fits v7x 64 MiB/TC with headroom)
_VMEM_LIMIT = 48 * 1024 * 1024       # scoped-VMEM limit handed to Mosaic (ok on v5e/v6e/v7x)


def _leaky_relu(x, negative_slope=0.01):
    # matches torch.nn.LeakyReLU() default (negative_slope=0.01)
    return jnp.where(x > 0, x, negative_slope * x)


def mlp_kernel(x_ref, w1_ref, b1_ref, w2_ref, b2_ref, w3_ref, b3_ref, o_ref):
    # Fused 3-layer MLP with batch on the lane axis:
    #   x_ref : (tb, x_size) natural-layout tile   wi : (out_i, in_i)   bi : (out_i, 1)
    #   o_ref : (1, tb) lane-dense output tile
    xt = x_ref[...].T                                               # (x_size, tb): batch -> lanes
    h1 = jnp.dot(w1_ref[...], xt, preferred_element_type=jnp.float32) + b1_ref[...]
    h1 = _leaky_relu(h1)                                            # (20, tb)
    h2 = jnp.dot(w2_ref[...], h1, preferred_element_type=jnp.float32) + b2_ref[...]
    h2 = _leaky_relu(h2)                                            # (10, tb)
    o = jnp.dot(w3_ref[...], h2, preferred_element_type=jnp.float32) + b3_ref[...]
    o_ref[...] = o.astype(o_ref.dtype)                              # (1, tb) unmasked store


def _round_up(x, m):
    return (x + m - 1) // m * m


def _choose_tile(B, x_size, block_batch):
    """Batch-tile width (lanes per grid step), sized from VMEM, not a fixed constant."""
    # f32 bytes resident in VMEM per batch lane: double-buffered x tile (2*x_size) +
    # in-kernel transposed copy (x_size) + h1 (20) + h2 (10) + double-buffered out (2) + slack.
    bytes_per_lane = 4 * (3 * x_size + 40)
    cap = (_VMEM_BUDGET // bytes_per_lane) // _LANE * _LANE
    cap = max(_LANE, min(_round_up(block_batch, _LANE), cap))
    # Keep >= 2 grid steps whenever possible so ("parallel",) shards tiles across both
    # TensorCores on v7x megacore instead of collapsing to grid=(1,).
    tb = min(cap, _round_up(pl.cdiv(B, 2), _LANE))
    if tb >= B:
        tb = B          # single exact block: handles small / non-tile-aligned B directly
    return tb


@functools.partial(jax.jit, static_argnames=("block_batch",))
def ann_forward(x, params, *, block_batch=32768):
    """ANN.forward: Linear(x,20) -> LeakyReLU -> Linear(20,10) -> LeakyReLU -> Linear(10,1).

    x: (B, x_size) float32.  Returns (B, 1) float32.
    """
    w1, b1, w2, b2, w3, b3 = params
    B, x_size = x.shape

    tb = _choose_tile(B, x_size, block_batch)
    grid = (pl.cdiv(B, tb),)            # ragged tail handled by Pallas partial edge blocks

    resident = lambda i: (0, 0)         # tiny weights/biases stay VMEM-resident (same block every step)

    flops = 2 * B * (x_size * 20 + 20 * 10 + 10 * 1)
    bytes_accessed = 4 * (B * (x_size + 1)
                          + w1.size + b1.size + w2.size + b2.size + w3.size + b3.size)

    out = pl.pallas_call(
        mlp_kernel,
        out_shape=jax.ShapeDtypeStruct((1, B), jnp.float32),
        grid_spec=pltpu.PrefetchScalarGridSpec(
            num_scalar_prefetch=0,
            grid=grid,
            in_specs=[
                pl.BlockSpec((tb, x_size), lambda i: (i, 0)),       # streamed natural-layout x tiles
                pl.BlockSpec(w1.shape, resident),
                pl.BlockSpec(b1.shape, resident),
                pl.BlockSpec(w2.shape, resident),
                pl.BlockSpec(b2.shape, resident),
                pl.BlockSpec(w3.shape, resident),
                pl.BlockSpec(b3.shape, resident),
            ],
            out_specs=pl.BlockSpec((1, tb), lambda i: (0, i)),
        ),
        compiler_params=pltpu.CompilerParams(
            # batch tiles are independent -> shard across TensorCores on v7x megacore
            dimension_semantics=("parallel",),
            vmem_limit_bytes=_VMEM_LIMIT,
        ),
        cost_estimate=pl.CostEstimate(
            flops=flops, transcendentals=0, bytes_accessed=bytes_accessed),
    )(x, w1, b1, w2, b2, w3, b3)

    return out.reshape(B, 1)                                        # back to (B, 1)


def init_params(key, x_size):
    """PyTorch nn.Linear-style init (uniform ±1/sqrt(fan_in)).
    Weights stored as (out, in) (PyTorch layout); biases as (out, 1)."""
    dims = [(x_size, 20), (20, 10), (10, 1)]
    params = []
    for fan_in, fan_out in dims:
        key, kw, kb = jax.random.split(key, 3)
        bound = 1.0 / jnp.sqrt(float(fan_in))
        w = jax.random.uniform(kw, (fan_out, fan_in), jnp.float32, -bound, bound)
        b = jax.random.uniform(kb, (fan_out, 1), jnp.float32, -bound, bound)
        params += [w, b]
    return tuple(params)


def ann_forward_ref(x, params):
    w1, b1, w2, b2, w3, b3 = params
    h1 = _leaky_relu(x @ w1.T + b1.T)
    h2 = _leaky_relu(h1 @ w2.T + b2.T)
    return h2 @ w3.T + b3.T


if __name__ == "__main__":
    key = jax.random.PRNGKey(0)
    kx, kp = jax.random.split(key)

    batch, x_size = 8, 32
    x = jax.random.normal(kx, (batch, x_size), dtype=jnp.float32)
    params = init_params(kp, x_size)

    out = jax.block_until_ready(ann_forward(x, params))
    ref = ann_forward_ref(x, params)
    assert out.shape == (batch, 1)
    assert jnp.allclose(out, ref, atol=1e-4, rtol=1e-4)

    # Ragged multi-step grid: B not a multiple of the tile -> partial final input/output blocks
    # (masked final store path the review asked to verify, on real hardware).
    batch2 = 300
    x2 = jax.random.normal(kx, (batch2, x_size), dtype=jnp.float32)
    out2 = jax.block_until_ready(ann_forward(x2, params, block_batch=128))
    ref2 = ann_forward_ref(x2, params)
    assert out2.shape == (batch2, 1)
    assert jnp.allclose(out2, ref2, atol=1e-4, rtol=1e-4)

    # Aligned multi-step grid with a wider tile (exercises the in-kernel relayout path).
    batch3 = 8192
    x3 = jax.random.normal(kx, (batch3, x_size), dtype=jnp.float32)
    out3 = jax.block_until_ready(ann_forward(x3, params))
    ref3 = ann_forward_ref(x3, params)
    assert out3.shape == (batch3, 1)
    assert jnp.allclose(out3, ref3, atol=1e-4, rtol=1e-4)

    print("KERNEL_OK")
</pallas_src>

<mosaic_0001>
module attributes {stable_mosaic.version = 11 : i64} {
  func.func @mlp_kernel(%arg0: i32, %arg1: memref<8x32xf32, #tpu.memory_space<vmem>>, %arg2: memref<20x32xf32, #tpu.memory_space<vmem>>, %arg3: memref<20x1xf32, #tpu.memory_space<vmem>>, %arg4: memref<10x20xf32, #tpu.memory_space<vmem>>, %arg5: memref<10x1xf32, #tpu.memory_space<vmem>>, %arg6: memref<1x10xf32, #tpu.memory_space<vmem>>, %arg7: memref<1x1xf32, #tpu.memory_space<vmem>>, %arg8: memref<1x8xf32, #tpu.memory_space<vmem>>) attributes {dimension_semantics = [#tpu.dimension_semantics<parallel>], iteration_bounds = array<i64: 1>, scalar_prefetch = 0 : i64, scratch_operands = 0 : i64, tpu.core_type = #tpu.core_type<tc>, window_params = [{transform_indices = @transform_0, window_bounds = array<i64: 8, 32>}, {pipeline_mode = #tpu.pipeline_mode<synchronous>, transform_indices = @transform_1, window_bounds = array<i64: 20, 32>}, {pipeline_mode = #tpu.pipeline_mode<synchronous>, transform_indices = @transform_2, window_bounds = array<i64: 20, 1>}, {pipeline_mode = #tpu.pipeline_mode<synchronous>, transform_indices = @transform_3, window_bounds = array<i64: 10, 20>}, {pipeline_mode = #tpu.pipeline_mode<synchronous>, transform_indices = @transform_4, window_bounds = array<i64: 10, 1>}, {pipeline_mode = #tpu.pipeline_mode<synchronous>, transform_indices = @transform_5, window_bounds = array<i64: 1, 10>}, {pipeline_mode = #tpu.pipeline_mode<synchronous>, transform_indices = @transform_6, window_bounds = array<i64: 1, 1>}, {transform_indices = @transform_7, window_bounds = array<i64: 1, 8>}]} {
    %c0 = arith.constant 0 : index
    %c0_0 = arith.constant 0 : index
    %0 = vector.load %arg1[%c0, %c0_0] : memref<8x32xf32, #tpu.memory_space<vmem>>, vector<8x32xf32>
    %1 = tpu.transpose %0, [1, 0] : vector<8x32xf32> -> vector<32x8xf32>
    %c0_1 = arith.constant 0 : index
    %c0_2 = arith.constant 0 : index
    %2 = vector.load %arg2[%c0_1, %c0_2] : memref<20x32xf32, #tpu.memory_space<vmem>>, vector<20x32xf32>
    %cst = arith.constant dense<0.000000e+00> : vector<20x8xf32>
    %3 = tpu.matmul %2, %1, %cst {dimension_numbers = #tpu.dot_dimension_numbers<[1], [0], [0], [1], [0, 0, 1, 1], [], []>} : vector<20x32xf32>, vector<32x8xf32>, vector<20x8xf32> -> vector<20x8xf32>
    %c0_3 = arith.constant 0 : index
    %c0_4 = arith.constant 0 : index
    %4 = vector.load %arg3[%c0_3, %c0_4] : memref<20x1xf32, #tpu.memory_space<vmem>>, vector<20x1xf32>
    %5 = vector.broadcast %4 : vector<20x1xf32> to vector<20x8xf32>
    %6 = arith.addf %3, %5 : vector<20x8xf32>
    %cst_5 = arith.constant 0.000000e+00 : f32
    %7 = vector.broadcast %cst_5 : f32 to vector<20x8xf32>
    %8 = arith.cmpf ogt, %6, %7 : vector<20x8xf32>
    %cst_6 = arith.constant 0.00999999977 : f32
    %9 = vector.broadcast %cst_6 : f32 to vector<20x8xf32>
    %10 = arith.mulf %9, %6 : vector<20x8xf32>
    %11 = arith.select %8, %6, %10 : vector<20x8xi1>, vector<20x8xf32>
    %c0_7 = arith.constant 0 : index
    %c0_8 = arith.constant 0 : index
    %12 = vector.load %arg4[%c0_7, %c0_8] : memref<10x20xf32, #tpu.memory_space<vmem>>, vector<10x20xf32>
    %cst_9 = arith.constant dense<0.000000e+00> : vector<10x8xf32>
    %13 = tpu.matmul %12, %11, %cst_9 {dimension_numbers = #tpu.dot_dimension_numbers<[1], [0], [0], [1], [0, 0, 1, 1], [], []>} : vector<10x20xf32>, vector<20x8xf32>, vector<10x8xf32> -> vector<10x8xf32>
    %c0_10 = arith.constant 0 : index
    %c0_11 = arith.constant 0 : index
    %14 = vector.load %arg5[%c0_10, %c0_11] : memref<10x1xf32, #tpu.memory_space<vmem>>, vector<10x1xf32>
    %15 = vector.broadcast %14 : vector<10x1xf32> to vector<10x8xf32>
    %16 = arith.addf %13, %15 : vector<10x8xf32>
    %cst_12 = arith.constant 0.000000e+00 : f32
    %17 = vector.broadcast %cst_12 : f32 to vector<10x8xf32>
    %18 = arith.cmpf ogt, %16, %17 : vector<10x8xf32>
    %cst_13 = arith.constant 0.00999999977 : f32
    %19 = vector.broadcast %cst_13 : f32 to vector<10x8xf32>
    %20 = arith.mulf %19, %16 : vector<10x8xf32>
    %21 = arith.select %18, %16, %20 : vector<10x8xi1>, vector<10x8xf32>
    %c0_14 = arith.constant 0 : index
    %c0_15 = arith.constant 0 : index
    %22 = vector.load %arg6[%c0_14, %c0_15] : memref<1x10xf32, #tpu.memory_space<vmem>>, vector<1x10xf32>
    %cst_16 = arith.constant dense<0.000000e+00> : vector<1x8xf32>
    %23 = tpu.matmul %22, %21, %cst_16 {dimension_numbers = #tpu.dot_dimension_numbers<[1], [0], [0], [1], [0, 0, 1, 1], [], []>} : vector<1x10xf32>, vector<10x8xf32>, vector<1x8xf32> -> vector<1x8xf32>
    %c0_17 = arith.constant 0 : index
    %c0_18 = arith.constant 0 : index
    %24 = vector.load %arg7[%c0_17, %c0_18] : memref<1x1xf32, #tpu.memory_space<vmem>>, vector<1x1xf32>
    %25 = vector.broadcast %24 : vector<1x1xf32> to vector<1x8xf32>
    %26 = arith.addf %23, %25 : vector<1x8xf32>
    %c0_19 = arith.constant 0 : index
    %c0_20 = arith.constant 0 : index
    %27 = vector.load %arg8[%c0_19, %c0_20] : memref<1x8xf32, #tpu.memory_space<vmem>>, vector<1x8xf32>
    tpu.vector_store %arg8[%c0_19, %c0_20], %26 {strides = array<i32>} : memref<1x8xf32, #tpu.memory_space<vmem>>, vector<1x8xf32>,
    return
  }
  func.func @transform_0(%arg0: i32) -> (i32, i32) {
    %c0_i32 = arith.constant 0 : i32
    %c0_i32_0 = arith.constant 0 : i32
    return %arg0, %c0_i32 : i32, i32
  }
  func.func @transform_1(%arg0: i32) -> (i32, i32) {
    %c0_i32 = arith.constant 0 : i32
    %c0_i32_0 = arith.constant 0 : i32
    %c0_i32_1 = arith.constant 0 : i32
    return %c0_i32, %c0_i32_0 : i32, i32
  }
  func.func @transform_2(%arg0: i32) -> (i32, i32) {
    %c0_i32 = arith.constant 0 : i32
    %c0_i32_0 = arith.constant 0 : i32
    %c0_i32_1 = arith.constant 0 : i32
    return %c0_i32, %c0_i32_0 : i32, i32
  }
  func.func @transform_3(%arg0: i32) -> (i32, i32) {
    %c0_i32 = arith.constant 0 : i32
    %c0_i32_0 = arith.constant 0 : i32
    %c0_i32_1 = arith.constant 0 : i32
    return %c0_i32, %c0_i32_0 : i32, i32
  }
  func.func @transform_4(%arg0: i32) -> (i32, i32) {
    %c0_i32 = arith.constant 0 : i32
    %c0_i32_0 = arith.constant 0 : i32
    %c0_i32_1 = arith.constant 0 : i32
    return %c0_i32, %c0_i32_0 : i32, i32
  }
  func.func @transform_5(%arg0: i32) -> (i32, i32) {
    %c0_i32 = arith.constant 0 : i32
    %c0_i32_0 = arith.constant 0 : i32
    %c0_i32_1 = arith.constant 0 : i32
    return %c0_i32, %c0_i32_0 : i32, i32
  }
  func.func @transform_6(%arg0: i32) -> (i32, i32) {
    %c0_i32 = arith.constant 0 : i32
    %c0_i32_0 = arith.constant 0 : i32
    %c0_i32_1 = arith.constant 0 : i32
    return %c0_i32, %c0_i32_0 : i32, i32
  }
  func.func @transform_7(%arg0: i32) -> (i32, i32) {
    %c0_i32 = arith.constant 0 : i32
    %c0_i32_0 = arith.constant 0 : i32
    return %c0_i32, %arg0 : i32, i32
  }
}

</mosaic_0001>

<bundles_post_ra>
// kernel: ann_forward.1
= control target key start
LH: loop header
LB: loop body
LE: loop exit
PB: predicated region body
PF: predicated region fallthrough
CT: control target
= control target key end

     0   :  { %s580_s0 = inlined_call_operand.hbm [shape: f32[8,32], index: 0, kind: input, shape index: {}]   ;;  %s581_s1 = inlined_call_operand.vmem [shape: f32[20,32], index: 1, kind: input, shape index: {}]   ;;  %s582_s2 = inlined_call_operand.vmem [shape: f32[20,1], index: 2, kind: input, shape index: {}]   ;;  %s583_s3 = inlined_call_operand.vmem [shape: f32[10,20], index: 3, kind: input, shape index: {}]   ;;  %s584_s4 = inlined_call_operand.vmem [shape: f32[10,1], index: 4, kind: input, shape index: {}]   ;;  %s585_s5 = inlined_call_operand.vmem [shape: f32[1,10], index: 5, kind: input, shape index: {}]   ;;  %s586_s6 = inlined_call_operand.<no memory space> [shape: f32[1,1], index: 6, kind: input, shape index: {}]   ;;  %s587_s7 = inlined_call_operand.hbm [shape: f32[1,8], index: 7, kind: output, shape index: {}]  }
   0x1   :  { %v12_v0 = vstv %s586_s6 }
   0x2   :  { %13 = vst [vmem:[#allocation2] sm:$0x1] %v12_v0 }
   0x3   :  { %14 = vsyncpa [#allocation4], 0 }
   0x4   :  { %15 = vsyncpa [#allocation5], 0  ;;  %s476_s26 = smov [#allocation3]  }
   0x5   :  { %s22_s27 = sshll.u32 %s476_s26, 4  ;;  %s23_s27 = int_to_ptr.vmem [resolvable:$true] %s22_s27 }
   0x6   :  { %s440_s28 = scalar_lea.vmem %s23_s27, 128  ;;  %p445_p1 = scmp.lt.s32.totalorder %s23_s27, %s23_s27 }
   0x7   :  { %p441_p0 = scmp.ne.s32.totalorder %s23_s27, %s440_s28  ;;  %p446_p2 = scmp.lt.s32.totalorder %s440_s28, %s440_s28 }
   0x9   :  { %p447_p3 = por %p446_p2, %p445_p1 }
   0xb   :  { %p448_p4 = pnand %p447_p3, %p441_p0 }
   0xd   :  { %451 = shalt.err (!%p448_p4)
}
   0xe   :  { %25 = dma.hbm_to_vmem [thread:$0]  %s580_s0, 128, %s23_s27, [#allocation4]  }
   0xf   :  { %472 = dma.done.wait [#allocation4], 128  }
  0x10   :  { %473 = vsyncadd [#allocation4], 4294967168  ;;  %v477_v1 = vmov 0.0   ;;  %vm478_vm0 = vmmov 0   ;;  %v479_v2 = vmov 0   ;;  %vm63_vm1 = vcmask 261120  }
  0x11   :  { %398 = vmatprep.subr.mxu0 %v477_v1  ;;  %400 = vmatprep.mubr.msk.f32.mxu0 %vm478_vm0, %v477_v1  ;;  %v41_v3 = vld [vmem:[#allocation3] sm:$0xff]  ;;  %v47_v5 = vld [vmem:[%s582_s2 + $0x10] sm:$0xf]  ;;  %v272_v11 = vld [vmem:[#allocation2] sm:$0x1]  ;;  %vm179_vm2 = vcmask 162816   ;;  %v278_v44 = vlaneseq }
  0x12   :  { %430 = vset.pattern.permute.xlu0 %v479_v2  ;;  %431 = vset.pattern.permute.xlu1 %v479_v2  ;;  %v42_v4 = vld [vmem:[%s581_s1] sm:$0xff]  ;;  %v46_v7 = vld [vmem:[%s582_s2 + $0x8] sm:$0xff]  ;;  %v44_v12 = vld [vmem:[%s581_s1 + $0x10] sm:$0xf]  ;;  %vm186_vm4 = vcmask 1043456   ;;  %vm286_vm8 = vcmask 1041408  }
  0x13   :  { %399 = vmatpush3.xpose.msk.msra.mxu0 %vm63_vm1, %v41_v3  ;;  %v45_v6 = vld [vmem:[%s582_s2] sm:$0xff]  ;;  %60 = vperm.xlu0 %430, %v47_v5   ;;  %v168_v8 = vld [vmem:[%s584_s4 + $0x8] sm:$0x3]  ;;  %vm282_vm10 = vcmask 80896   ;;  %v279_v45 = vshrl.u32 %v278_v44, 7  ;;  %s480_s24 = smov [#allocation6]  }
  0x14   :  { %50 = vperm.xlu1 %431, %v45_v6   ;;  %v43_v9 = vld [vmem:[%s581_s1 + $0x8] sm:$0xff]  ;;  %v167_v10 = vld [vmem:[%s584_s4] sm:$0xff]  ;;  %s368_s25 = sshll.u32 %s480_s24, 4  ;;  %vm360_vm11 = vcmask 57344   ;;  %s369_s25 = int_to_ptr.vmem [resolvable:$true] %s368_s25 }
  0x15   :  { %v165_v13 = vld [vmem:[%s583_s3] sm:$0xff]  ;;  %v166_v32 = vld [vmem:[%s583_s3 + $0x8] sm:$0x3]  ;;  %v280_v46 = vsub.s32 0, %v279_v45  ;;  %s456_s26 = scalar_lea.vmem %s369_s25, 32  ;;  %p457_p6 = scmp.lt.s32.totalorder %s369_s25, %s369_s25 }
  0x16   :  { %401 = vmatmul.mubr.msk.f32.vlgmr.msra.gmra.mxu0 %vm63_vm1, %v42_v4  ;;  %415 = vmatprep.mubr.msk.f32.mxu1 %vm179_vm2, %v165_v13  ;;  %v271_v42 = vld [vmem:[%s585_s5] sm:$0x1]  ;;  %s452_s5 = scalar_lea.vmem %s369_s25, 16 }
  0x17   :  { %403 = vmatprep.mubr.msk.f32.mxu0 %vm478_vm0, %v477_v1  ;;  %55 = vperm.xlu0 %430, %v46_v7   ;;  %p453_p5 = scmp.ne.s32.totalorder %s369_s25, %s452_s5  ;;  %p458_p7 = scmp.lt.s32.totalorder %s456_s26, %s452_s5 }
  0x18   :  { %176 = vperm.xlu1 %431, %v168_v8  }
  0x19   :  { %p459_p8 = por %p458_p7, %p457_p6 }
  0x1a   :  { %404 = vmatmul.mubr.msk.f32.gmra.mxu0 %vm63_vm1, %v43_v9 }
  0x1b   :  { %406 = vmatprep.mubr.msk.f32.mxu0 %vm478_vm0, %v477_v1  ;;  %171 = vperm.xlu0 %430, %v167_v10   ;;  %p460_p9 = pnand %p459_p8, %p453_p5 }
  0x1c   :  { %275 = vperm.xlu1 %431, %v272_v11  }
  0x1e   :  { %407 = vmatmul.mubr.msk.f32.gmra.mxu0 %vm63_vm1, %v44_v12 }
  0x8e   :  { %v61_v14 = vpop.permute.xlu0 %60 }
  0x8f   :  { %v51_v18 = vpop.permute.xlu1 %50 }
  0x92   :  { %v56_v19 = vpop.permute.xlu0 %55 }
  0x93   :  { %v177_v33 = vpop.permute.xlu1 %176 }
  0x96   :  { %v172_v36 = vpop.permute.xlu0 %171 }
  0x97   :  { %v276_v47 = vpop.permute.xlu1 %275 }
  0x98   :  { %v281_v48 = vrot.slane %v276_v47, %v280_v46 }
  0xd6   :  { %v142_v15 = vpop.f32.mrf.mxu0 }
  0xd7   :  { %v143_v23 = vadd.f32 %v142_v15, %v51_v18 }
  0xd8   :  { %v402_v16 = vpop.f32.mrf.mxu0 }
  0xd9   :  { %v159_v28 = vmul.f32 0.01, %v143_v23  ;;  %vm156_vm6 = vcmp.gt.f32.partialorder %v143_v23, 0.0 }
  0xda   :  { %v147_v17 = vpop.f32.mrf.mxu0 }
  0xdb   :  { %v148_v21 = vadd.f32 %v147_v17, %v56_v19  ;;  %v162_v31 = vsel %vm156_vm6, %v143_v23, %v159_v28 }
  0xdc   :  { %v405_v20 = vpop.f32.mrf.mxu0 }
  0xdd   :  { %v160_v26 = vmul.f32 0.01, %v148_v21  ;;  %vm157_vm5 = vcmp.gt.f32.partialorder %v148_v21, 0.0 }
  0xde   :  { %v152_v22 = vpop.f32.mrf.mxu0 }
  0xdf   :  { %v153_v24 = vadd.f32 %v152_v22, %v61_v14  ;;  %v163_v30 = vsel %vm157_vm5, %v148_v21, %v160_v26 }
  0xe0   :  { %v408_v25 = vpop.f32.mrf.mxu0 }
  0xe1   :  { %vm158_vm3 = vcmp.gt.f32.partialorder %v153_v24, 0.0  ;;  %v161_v27 = vmul.f32 0.01, %v153_v24 }
  0xe3   :  { %v164_v29 = vsel %vm158_vm3, %v153_v24, %v161_v27 }
  0xe4   :  { %409 = vmatprep.subr.msk.mxu1 %vm186_vm4, %v164_v29 }
  0xe5   :  { %410 = vmatpush3.msk.msra.mxu1 %vm186_vm4, %v164_v29 }
  0xe6   :  { %411 = vmatprep.subr.mxu1 %v163_v30 }
  0xe7   :  { %412 = vmatpush3.msra.mxu1 %v163_v30 }
  0xe8   :  { %413 = vmatprep.subr.mxu1 %v162_v31 }
  0xe9   :  { %414 = vmatpush3.msra.mxu1 %v162_v31 }
  0xea   :  { %416 = vmatmul.mubr.msk.f32.vlgmr.msra.gmra.mxu1 %vm179_vm2, %v166_v32  ;;  %418 = vmatprep.subr.mxu1 %v477_v1 }
  0xeb   :  { %422 = vmatprep.mubr.msk.f32.mxu1 %vm478_vm0, %v477_v1 }
 0x1aa   :  { %v417_v34 = vpop.f32.mrf.mxu1 }
 0x1ab   :  { %v262_v35 = vadd.f32 %v417_v34, %v177_v33 }
 0x1ac   :  { %v256_v37 = vpop.f32.mrf.mxu1 }
 0x1ad   :  { %vm266_vm7 = vcmp.gt.f32.partialorder %v262_v35, 0.0  ;;  %v268_v38 = vmul.f32 0.01, %v262_v35  ;;  %v257_v39 = vadd.f32 %v256_v37, %v172_v36 }
 0x1af   :  { %v270_v40 = vsel %vm266_vm7, %v262_v35, %v268_v38  ;;  %vm265_vm9 = vcmp.gt.f32.partialorder %v257_v39, 0.0  ;;  %v267_v41 = vmul.f32 0.01, %v257_v39 }
 0x1b0   :  { %419 = vmatpush3.msk.msra.mxu1 %vm286_vm8, %v270_v40 }
 0x1b1   :  { %420 = vmatprep.subr.mxu1 %v477_v1  ;;  %v269_v43 = vsel %vm265_vm9, %v257_v39, %v267_v41 }
 0x1b2   :  { %421 = vmatpush3.msra.mxu1 %v269_v43 }
 0x1b3   :  { %423 = vmatmul.mubr.msk.f32.vlgmr.msra.gmra.mxu1 %vm282_vm10, %v271_v42 }
 0x273   :  { %v356_v49 = vpop.f32.mrf.mxu1 }
 0x274   :  { %v357_v50 = vadd.f32 %v356_v49, %v281_v48 }
 0x275   :  { %v424_v51 = vpop.f32.mrf.mxu1 }
 0x276   :  { %361 = vst.msk [vmem:[#allocation6] sm:$0x1] %vm360_vm11, %v357_v50 }
 0x277   :  { %463 = shalt.err (!%p460_p9)
}
 0x278   :  { %371 = dma.vmem_to_hbm [thread:$0]  %s369_s25, 16, %s587_s7, [#allocation5]  }
 0x279   :  { %474 = dma.done.wait [#allocation5], 16  }
 0x27a   :  { %475 = vsyncadd [#allocation5], 4294967280 }
 0x27b   :  { %375 = vsyncpa [#allocation4], 1 }
 0x27c   :  { %376 = vsyncpa [#allocation5], 1 }

</bundles_post_ra>
